<compile_context>
chip_gen: v7x
topology: tpu7x:2x2x1
jax: 0.10.0
libtpu: 0.0.40
codegen_flags: <defaults>
</compile_context>

<pallas_src>
import functools
import math

import jax
import jax.numpy as jnp
from jax import lax
from jax.experimental import pallas as pl
from jax.experimental.pallas import tpu as pltpu


def _round_up(x: int, m: int) -> int:
    return ((x + m - 1) // m) * m


@functools.lru_cache(maxsize=None)
def _tpu_params():
    """(vmem_capacity_bytes, tensorcores_per_device) with safe fallbacks."""
    vmem_cap = 128 * 1024 * 1024
    num_tc = 1
    kind = ""
    try:
        kind = jax.devices()[0].device_kind.lower()
    except Exception:
        pass
    if "v7" in kind:
        vmem_cap, num_tc = 64 * 1024 * 1024, 2       # v7x: 64 MiB VMEM, 2 TC/chip
    elif ("v4" in kind) or ("v5p" in kind):
        num_tc = 2                                    # megacore generations
    try:                                              # refine if query available
        cap = int(getattr(pltpu.get_tpu_info(), "vmem_capacity_bytes", vmem_cap))
        if 16 * 1024 * 1024 <= cap <= 1024 * 1024 * 1024:
            vmem_cap = cap
    except Exception:
        pass
    return vmem_cap, num_tc


def _choose_tiling(prows, width, groups, itemsize, row_tile, chunk_rows):
    vmem_cap, num_tc = _tpu_params()
    sub = {1: 32, 2: 16, 4: 8}.get(itemsize, 8)       # dtype-native sublane tile

    width_pad = _round_up(width, 128)
    out_pad = _round_up(groups, 128)

    # Row sub-chunk: keeps in-kernel f32 intermediates (a, b, products) around
    # <= ~4 MiB regardless of the (large) DMA tile.
    chunk = (4 * 1024 * 1024) // (5 * width_pad * 4)
    chunk = max(sub, min(1024, (chunk // sub) * sub))

    # Double-buffered DMA footprint per block row (2 inputs + 1 output).
    dma_row_bytes = (2 * 2 * width_pad + 2 * out_pad) * itemsize
    if vmem_cap <= 64 * 1024 * 1024:                  # v7x-class (64 MiB VMEM)
        dma_budget, vmem_limit = 10 * 1024 * 1024, 44 * 1024 * 1024
    else:                                             # v5e / v6e (128 MiB VMEM)
        dma_budget, vmem_limit = 24 * 1024 * 1024, 64 * 1024 * 1024

    tm = max(sub, dma_budget // dma_row_bytes)
    if row_tile is not None:
        tm = min(tm, int(row_tile))
    if num_tc > 1:
        # At least 2 blocks per TensorCore so each core keeps its own
        # double-buffer pipeline busy.
        tm = min(tm, _round_up(pl.cdiv(prows, 2 * num_tc), sub))
    tm = min(tm, _round_up(prows, sub))
    tm = max(sub, (tm // sub) * sub)
    if prows < sub:
        tm = prows                                     # single block == full dims

    # Prefer a step count that is a multiple of the core count (load balance).
    steps = pl.cdiv(prows, tm)
    if num_tc > 1 and steps > 1 and steps % num_tc:
        cand = max(sub, _round_up(pl.cdiv(prows, _round_up(steps, num_tc)), sub))
        if pl.cdiv(prows, cand) % num_tc == 0:
            tm = cand

    if chunk_rows is not None:                         # test / tuning override
        chunk = max(1, int(chunk_rows))
    return tm, min(chunk, tm), vmem_limit


def _make_cosine_kernel(tm: int, chunk: int, use_selector: bool):
    """Kernel for blocks of shape (tm, width) -> (tm, groups)."""
    chunk = min(chunk, tm)
    n_full = tm // chunk
    rem = tm - n_full * chunk

    def _scores(a, b, sel):
        ab = a * b
        aa = a * a
        bb = b * b
        if sel is not None:
            # Segmented reductions on the MXU. sel is 0/1 and the products are
            # f32; HIGHEST keeps the f32 values exact through the matmul.
            dot = jnp.dot(ab, sel, precision=lax.Precision.HIGHEST,
                          preferred_element_type=jnp.float32)
            na2 = jnp.dot(aa, sel, precision=lax.Precision.HIGHEST,
                          preferred_element_type=jnp.float32)
            nb2 = jnp.dot(bb, sel, precision=lax.Precision.HIGHEST,
                          preferred_element_type=jnp.float32)
        else:
            dot = jnp.sum(ab, axis=-1, keepdims=True)
            na2 = jnp.sum(aa, axis=-1, keepdims=True)
            nb2 = jnp.sum(bb, axis=-1, keepdims=True)
        # Two rsqrts (EUP): no overflow/underflow of na2*nb2; == a/||a|| . b/||b||.
        return dot * lax.rsqrt(na2) * lax.rsqrt(nb2)

    def _body(a_ref, b_ref, sel, o_ref):
        def process(rs, size):
            a = a_ref[pl.ds(rs, size), :].astype(jnp.float32)
            b = b_ref[pl.ds(rs, size), :].astype(jnp.float32)
            o_ref[pl.ds(rs, size), :] = _scores(a, b, sel).astype(o_ref.dtype)

        if n_full <= 1 and rem == 0:
            process(0, tm)
        else:
            def step(c, carry):
                process(pl.multiple_of(c * chunk, chunk), chunk)
                return carry
            lax.fori_loop(0, n_full, step, 0)
            if rem:
                process(n_full * chunk, rem)

    if use_selector:
        def kernel(a_ref, b_ref, s_ref, o_ref):
            _body(a_ref, b_ref, s_ref[...], o_ref)
    else:
        def kernel(a_ref, b_ref, o_ref):
            _body(a_ref, b_ref, None, o_ref)
    return kernel


def cosine_similarity_scorer(audio_embedding: jax.Array,
                             location_embedding: jax.Array,
                             *, row_tile=None, chunk_rows=None) -> jax.Array:
    """Cosine similarity along the last axis, batched over leading dims."""
    assert audio_embedding.shape == location_embedding.shape, (
        "identical (*batch, d_embedding) shapes expected")
    assert audio_embedding.dtype == location_embedding.dtype
    *batch, d = audio_embedding.shape
    batch = tuple(batch)
    rows = math.prod(batch) if batch else 1

    # Pack several logical embeddings per 128-lane row when d is a small
    # divisor of 128 (metadata-only reshape of the row-major layout).
    groups = 1
    if d < 128 and 128 % d == 0 and (128 // d) <= 16 and rows % (128 // d) == 0:
        groups = 128 // d
    prows = rows // groups
    width = groups * d

    a2 = audio_embedding.reshape(prows, width)
    b2 = location_embedding.reshape(prows, width)

    tm, chunk, vmem_limit = _choose_tiling(
        prows, width, groups, audio_embedding.dtype.itemsize, row_tile, chunk_rows)

    use_selector = groups > 1
    inputs = [a2, b2]
    in_specs = [pl.BlockSpec((tm, width), lambda i: (i, 0)),
                pl.BlockSpec((tm, width), lambda i: (i, 0))]
    if use_selector:
        # 0/1 block-diagonal selector: column k sums lanes [k*d, (k+1)*d).
        sel = (jnp.arange(width, dtype=jnp.int32)[:, None] // d
               == jnp.arange(groups, dtype=jnp.int32)[None, :]).astype(jnp.float32)
        inputs.append(sel)
        in_specs.append(pl.BlockSpec((width, groups), lambda i: (0, 0)))

    grid = (pl.cdiv(prows, tm),)   # partial trailing block handled by Pallas

    out = pl.pallas_call(
        _make_cosine_kernel(tm, chunk, use_selector),
        out_shape=jax.ShapeDtypeStruct((prows, groups), audio_embedding.dtype),
        grid_spec=pltpu.PrefetchScalarGridSpec(
            num_scalar_prefetch=0,
            grid=grid,
            in_specs=in_specs,
            out_specs=pl.BlockSpec((tm, groups), lambda i: (i, 0)),
        ),
        compiler_params=pltpu.CompilerParams(
            dimension_semantics=("parallel",),
            vmem_limit_bytes=int(vmem_limit),
        ),
    )(*inputs)

    return out.reshape(batch)


if __name__ == "__main__":
    def ref_cosine(a, b):
        a = a.astype(jnp.float32)
        b = b.astype(jnp.float32)
        a_n = a / jnp.linalg.norm(a, axis=-1, keepdims=True)
        b_n = b / jnp.linalg.norm(b, axis=-1, keepdims=True)
        return jnp.sum(a_n * b_n, axis=-1)

    key = jax.random.PRNGKey(0)
    keys = jax.random.split(key, 10)
    d_embedding = 32

    # 1) Packed small-d path (selector matmul), f32, batch (4, 16).
    batch_shape = (4, 16)
    audio = jax.random.normal(keys[0], batch_shape + (d_embedding,), jnp.float32)
    location = jax.random.normal(keys[1], batch_shape + (d_embedding,), jnp.float32)
    scores = cosine_similarity_scorer(audio, location)
    jax.block_until_ready(scores)
    assert scores.shape == batch_shape
    assert jnp.allclose(scores, ref_cosine(audio, location), atol=2e-5, rtol=2e-5)

    # 2) Un-packed fallback (rows not divisible by 128//d) + partial block.
    a2 = jax.random.normal(keys[2], (9, d_embedding), jnp.float32)
    b2 = jax.random.normal(keys[3], (9, d_embedding), jnp.float32)
    s2 = cosine_similarity_scorer(a2, b2)
    jax.block_until_ready(s2)
    assert s2.shape == (9,)
    assert jnp.allclose(s2, ref_cosine(a2, b2), atol=2e-5, rtol=2e-5)

    # 3) Packed path with bf16 inputs (sublane tile 16).
    a3 = jax.random.normal(keys[4], (40, d_embedding), jnp.float32).astype(jnp.bfloat16)
    b3 = jax.random.normal(keys[5], (40, d_embedding), jnp.float32).astype(jnp.bfloat16)
    s3 = cosine_similarity_scorer(a3, b3)
    jax.block_until_ready(s3)
    assert s3.shape == (40,)
    assert jnp.allclose(s3.astype(jnp.float32), ref_cosine(a3, b3), atol=2e-2, rtol=2e-2)

    # 4) Wide-d (groups == 1) path, multi-step grid + partial trailing block.
    a4 = jax.random.normal(keys[6], (20, 256), jnp.float32)
    b4 = jax.random.normal(keys[7], (20, 256), jnp.float32)
    s4 = cosine_similarity_scorer(a4, b4, row_tile=8)
    jax.block_until_ready(s4)
    assert s4.shape == (20,)
    assert jnp.allclose(s4, ref_cosine(a4, b4), atol=2e-5, rtol=2e-5)

    # 5) Exercise the in-kernel chunked fori_loop + remainder code path.
    a5 = jax.random.normal(keys[8], (512, d_embedding), jnp.float32)
    b5 = jax.random.normal(keys[9], (512, d_embedding), jnp.float32)
    s5 = cosine_similarity_scorer(a5, b5, chunk_rows=24)
    jax.block_until_ready(s5)
    assert s5.shape == (512,)
    assert jnp.allclose(s5, ref_cosine(a5, b5), atol=2e-5, rtol=2e-5)

    print("KERNEL_OK")
</pallas_src>

<mosaic_0001>
module attributes {stable_mosaic.version = 11 : i64} {
  func.func @kernel(%arg0: i32, %arg1: memref<16x128xf32, #tpu.memory_space<vmem>>, %arg2: memref<16x128xf32, #tpu.memory_space<vmem>>, %arg3: memref<128x4xf32, #tpu.memory_space<vmem>>, %arg4: memref<16x4xf32, #tpu.memory_space<vmem>>) attributes {dimension_semantics = [#tpu.dimension_semantics<parallel>], iteration_bounds = array<i64: 1>, scalar_prefetch = 0 : i64, scratch_operands = 0 : i64, tpu.core_type = #tpu.core_type<tc>, window_params = [{transform_indices = @transform_0, window_bounds = array<i64: 16, 128>}, {transform_indices = @transform_1, window_bounds = array<i64: 16, 128>}, {pipeline_mode = #tpu.pipeline_mode<synchronous>, transform_indices = @transform_2, window_bounds = array<i64: 128, 4>}, {transform_indices = @transform_3, window_bounds = array<i64: 16, 4>}]} {
    %c0 = arith.constant 0 : index
    %c0_0 = arith.constant 0 : index
    %0 = vector.load %arg3[%c0, %c0_0] : memref<128x4xf32, #tpu.memory_space<vmem>>, vector<128x4xf32>
    %c0_1 = arith.constant 0 : index
    %c0_2 = arith.constant 0 : index
    %1 = vector.load %arg1[%c0_1, %c0_2] : memref<16x128xf32, #tpu.memory_space<vmem>>, vector<16x128xf32>
    %c0_3 = arith.constant 0 : index
    %c0_4 = arith.constant 0 : index
    %2 = vector.load %arg2[%c0_3, %c0_4] : memref<16x128xf32, #tpu.memory_space<vmem>>, vector<16x128xf32>
    %3 = arith.mulf %1, %2 : vector<16x128xf32>
    %4 = arith.mulf %1, %1 : vector<16x128xf32>
    %5 = arith.mulf %2, %2 : vector<16x128xf32>
    %cst = arith.constant dense<0.000000e+00> : vector<16x4xf32>
    %6 = tpu.matmul %3, %0, %cst {dimension_numbers = #tpu.dot_dimension_numbers<[1], [0], [0], [1], [0, 0, 1, 1], [], []>, precision = #tpu.contract_precision<fp32>} : vector<16x128xf32>, vector<128x4xf32>, vector<16x4xf32> -> vector<16x4xf32>
    %cst_5 = arith.constant dense<0.000000e+00> : vector<16x4xf32>
    %7 = tpu.matmul %4, %0, %cst_5 {dimension_numbers = #tpu.dot_dimension_numbers<[1], [0], [0], [1], [0, 0, 1, 1], [], []>, precision = #tpu.contract_precision<fp32>} : vector<16x128xf32>, vector<128x4xf32>, vector<16x4xf32> -> vector<16x4xf32>
    %cst_6 = arith.constant dense<0.000000e+00> : vector<16x4xf32>
    %8 = tpu.matmul %5, %0, %cst_6 {dimension_numbers = #tpu.dot_dimension_numbers<[1], [0], [0], [1], [0, 0, 1, 1], [], []>, precision = #tpu.contract_precision<fp32>} : vector<16x128xf32>, vector<128x4xf32>, vector<16x4xf32> -> vector<16x4xf32>
    %9 = math.rsqrt %7 : vector<16x4xf32>
    %10 = arith.mulf %6, %9 : vector<16x4xf32>
    %11 = math.rsqrt %8 : vector<16x4xf32>
    %12 = arith.mulf %10, %11 : vector<16x4xf32>
    %c0_7 = arith.constant 0 : index
    %c0_8 = arith.constant 0 : index
    %13 = vector.load %arg4[%c0_7, %c0_8] : memref<16x4xf32, #tpu.memory_space<vmem>>, vector<16x4xf32>
    tpu.vector_store %arg4[%c0_7, %c0_8], %12 {strides = array<i32>} : memref<16x4xf32, #tpu.memory_space<vmem>>, vector<16x4xf32>,
    return
  }
  func.func @transform_0(%arg0: i32) -> (i32, i32) {
    %c0_i32 = arith.constant 0 : i32
    %c0_i32_0 = arith.constant 0 : i32
    return %arg0, %c0_i32 : i32, i32
  }
  func.func @transform_1(%arg0: i32) -> (i32, i32) {
    %c0_i32 = arith.constant 0 : i32
    %c0_i32_0 = arith.constant 0 : i32
    return %arg0, %c0_i32 : i32, i32
  }
  func.func @transform_2(%arg0: i32) -> (i32, i32) {
    %c0_i32 = arith.constant 0 : i32
    %c0_i32_0 = arith.constant 0 : i32
    %c0_i32_1 = arith.constant 0 : i32
    return %c0_i32, %c0_i32_0 : i32, i32
  }
  func.func @transform_3(%arg0: i32) -> (i32, i32) {
    %c0_i32 = arith.constant 0 : i32
    %c0_i32_0 = arith.constant 0 : i32
    return %arg0, %c0_i32 : i32, i32
  }
}

</mosaic_0001>

<bundles_post_ra>
// kernel: tpu_custom_call.1
= control target key start
LH: loop header
LB: loop body
LE: loop exit
PB: predicated region body
PF: predicated region fallthrough
CT: control target
= control target key end

     0   :  { %8 = vsyncpa [#allocation3], 0  ;;  %s4570_s0 = inlined_call_operand.hbm [shape: f32[16,128], index: 0, kind: input, shape index: {}]   ;;  %s4571_s1 = inlined_call_operand.hbm [shape: f32[16,128], index: 1, kind: input, shape index: {}]   ;;  %s4572_s2 = inlined_call_operand.hbm [shape: f32[128,4], index: 2, kind: input, shape index: {}]   ;;  %s4573_s3 = inlined_call_operand.hbm [shape: f32[16,4], index: 3, kind: output, shape index: {}]  }
   0x1   :  { %9 = vsyncpa [#allocation6], 0 }
   0x2   :  { %10 = vsyncpa [#allocation4], 0  ;;  %s3831_s12 = smov [#allocation5]   ;;  %s3832_s14 = smov [#allocation2]  }
   0x3   :  { %s28_s13 = sshll.u32 %s3831_s12, 4  ;;  %s16_s15 = sshll.u32 %s3832_s14, 4  ;;  %s29_s13 = int_to_ptr.vmem [resolvable:$true] %s28_s13  ;;  %s3857_s15 = int_to_ptr.vmem [resolvable:$true] %s16_s15 }
   0x4   :  { %s3737_s18 = scalar_lea.hbm %s4571_s1, 256 }
   0x5   :  { %p3738_p0 = scmp.ne.s32.totalorder %s4571_s1, %s3737_s18  ;;  %p3741_p1 = scmp.lt.u32.totalorder %s3737_s18, %s4571_s1 }
   0x7   :  { %p3743_p2 = pnand %p3741_p1, %p3738_p0 }
   0x9   :  { %3746 = shalt.err (!%p3743_p2)
}
   0xa   :  { %s3747_s23 = scalar_lea.vmem %s29_s13, 256  ;;  %p3752_p4 = scmp.lt.s32.totalorder %s29_s13, %s29_s13 }
   0xb   :  { %p3748_p3 = scmp.ne.s32.totalorder %s29_s13, %s3747_s23  ;;  %p3753_p5 = scmp.lt.s32.totalorder %s3747_s23, %s3747_s23 }
   0xd   :  { %p3754_p6 = por %p3753_p5, %p3752_p4 }
   0xf   :  { %p3755_p7 = pnand %p3754_p6, %p3748_p3 }
  0x11   :  { %3758 = shalt.err (!%p3755_p7)
}
  0x12   :  { %s3833_s24 = smov 128   ;;  %s3834_s25 = smov 8  }
  0x13   :  { %34 = dma.hbm_to_vmem [thread:$0]  %s4571_s1, 256, %s29_s13, [#allocation6], %s3833_s24, %s3833_s24, %s3834_s25  }
  0x14   :  { %s3759_s30 = scalar_lea.hbm %s4570_s0, 256 }
  0x15   :  { %p3760_p8 = scmp.ne.s32.totalorder %s4570_s0, %s3759_s30  ;;  %p3763_p9 = scmp.lt.u32.totalorder %s3759_s30, %s4570_s0 }
  0x17   :  { %p3765_p10 = pnand %p3763_p9, %p3760_p8 }
  0x19   :  { %3768 = shalt.err (!%p3765_p10)
}
  0x1a   :  { %s3769_s8 = scalar_lea.vmem %s3857_s15, 256  ;;  %p3774_p12 = scmp.lt.s32.totalorder %s3857_s15, %s3857_s15 }
  0x1b   :  { %p3770_p11 = scmp.ne.s32.totalorder %s3857_s15, %s3769_s8  ;;  %p3775_p13 = scmp.lt.s32.totalorder %s3769_s8, %s3769_s8 }
  0x1d   :  { %p3776_p0 = por %p3775_p13, %p3774_p12 }
  0x1f   :  { %p3777_p1 = pnand %p3776_p0, %p3770_p11 }
  0x21   :  { %3780 = shalt.err (!%p3777_p1)
}
  0x22   :  { %22 = dma.hbm_to_vmem [thread:$0]  %s4570_s0, 256, %s3857_s15, [#allocation3], %s3833_s24, %s3833_s24, %s3834_s25  }
  0x23   :  { %s3835_s10 = smov [#allocation7]   ;;  %s3781_s14 = scalar_lea.hbm %s4572_s2, 2048 }
  0x24   :  { %s40_s11 = sshll.u32 %s3835_s10, 4  ;;  %p3782_p2 = scmp.ne.s32.totalorder %s4572_s2, %s3781_s14  ;;  %s41_s11 = int_to_ptr.vmem [resolvable:$true] %s40_s11 }
  0x25   :  { %p3785_p3 = scmp.lt.u32.totalorder %s3781_s14, %s4572_s2 }
  0x27   :  { %p3787_p4 = pnand %p3785_p3, %p3782_p2 }
  0x29   :  { %3790 = shalt.err (!%p3787_p4)
}
  0x2a   :  { %s3791_s20 = scalar_lea.vmem %s41_s11, 2048  ;;  %p3796_p6 = scmp.lt.s32.totalorder %s41_s11, %s41_s11 }
  0x2b   :  { %p3792_p5 = scmp.ne.s32.totalorder %s41_s11, %s3791_s20  ;;  %p3797_p7 = scmp.lt.s32.totalorder %s3791_s20, %s3791_s20 }
  0x2d   :  { %p3798_p8 = por %p3797_p7, %p3796_p6 }
  0x2f   :  { %p3799_p9 = pnand %p3798_p8, %p3792_p5 }
  0x31   :  { %3802 = shalt.err (!%p3799_p9)
}
  0x32   :  { %46 = dma.hbm_to_vmem [thread:$0]  %s4572_s2, 2048, %s41_s11, [#allocation6], %s3833_s24, %s3833_s24, %s3834_s25  }
  0x33   :  { %3825 = dma.done.wait [#allocation3], 256  }
  0x34   :  { %3826 = vsyncadd [#allocation3], 4294967040 }
  0x35   :  { %3827 = dma.done.wait [#allocation6], 2304  }
  0x36   :  { %3828 = vsyncadd [#allocation6], 4294964992  ;;  %v56_v0 = vld [vmem:[#allocation7] sm:$0xff]  ;;  %v57_v1 = vld [vmem:[#allocation7 + $0x8] sm:$0xff]  ;;  %vm2142_vm0 = vcmask 31744   ;;  %s3836_s2 = smov [#allocation8]  }
  0x37   :  { %v3909_v2 = vld [vmem:[#allocation7 + $0x10] sm:$0xff]  ;;  %v83_v3 = vand.u32 4294901760, %v56_v0  ;;  %v86_v4 = vand.u32 4294901760, %v57_v1  ;;  %v3911_v5 = vld [vmem:[#allocation7 + $0x18] sm:$0xff]  ;;  %v3914_v7 = vld [vmem:[#allocation7 + $0x20] sm:$0xff]  ;;  %s2150_s21 = sshll.u32 %s3836_s2, 4  ;;  %s2151_s21 = int_to_ptr.vmem [resolvable:$true] %s2150_s21 }
  0x38   :  { %v89_v6 = vand.u32 4294901760, %v3909_v2  ;;  %v3916_v8 = vld [vmem:[#allocation7 + $0x28] sm:$0xff]  ;;  %v92_v9 = vand.u32 4294901760, %v3911_v5  ;;  %v95_v11 = vand.u32 4294901760, %v3914_v7  ;;  %v3929_v14 = vld [vmem:[#allocation7 + $0x30] sm:$0xff]  ;;  %v3931_v15 = vld [vmem:[#allocation7 + $0x38] sm:$0xff]  ;;  %p3808_p11 = scmp.lt.s32.totalorder %s2151_s21, %s2151_s21 }
  0x39   :  { %v3919_v10 = vpack.c.bf16 %v86_v4, %v83_v3  ;;  %v98_v12 = vand.u32 4294901760, %v3916_v8  ;;  %v3935_v16 = vld [vmem:[#allocation2] sm:$0xff]  ;;  %v3937_v17 = vld [vmem:[#allocation5] sm:$0xff]  ;;  %v101_v20 = vand.u32 4294901760, %v3929_v14  ;;  %v104_v21 = vand.u32 4294901760, %v3931_v15  ;;  %v3955_v23 = vld [vmem:[#allocation7 + $0x48] sm:$0xff] }
  0x3a   :  { %v3927_v13 = vpack.c.bf16 %v92_v9, %v89_v6  ;;  %v76_v18 = vmul.f32 %v3937_v17, %v3935_v16  ;;  %v3953_v22 = vld [vmem:[#allocation7 + $0x40] sm:$0xff]  ;;  %v3964_v26 = vld [vmem:[#allocation2 + $0x8] sm:$0xff]  ;;  %v3966_v27 = vld [vmem:[#allocation5 + $0x8] sm:$0xff]  ;;  %v110_v30 = vand.u32 4294901760, %v3955_v23  ;;  %v3988_v36 = vsub.f32 %v56_v0, %v83_v3  ;;  %s3803_s22 = scalar_lea.vmem %s2151_s21, 256 }
  0x3b   :  { %3118 = vmatprep.subr.bf16.mxu1 %v3919_v10  ;;  %3214 = vmatprep.subr.bf16.mxu0 %v3919_v10  ;;  %v3949_v19 = vpack.c.bf16 %v98_v12, %v95_v11  ;;  %v3974_v28 = vpack.c.bf16 %v104_v21, %v101_v20  ;;  %v107_v29 = vand.u32 4294901760, %v3953_v22  ;;  %v3978_v31 = vld [vmem:[#allocation7 + $0x50] sm:$0xff]  ;;  %v3980_v32 = vld [vmem:[#allocation7 + $0x58] sm:$0xff]  ;;  %v77_v34 = vmul.f32 %v3966_v27, %v3964_v26  ;;  %v4002_v41 = vld [vmem:[#allocation7 + $0x60] sm:$0xff]  ;;  %p3804_p10 = scmp.ne.s32.totalorder %s2151_s21, %s3803_s22  ;;  %p3809_p12 = scmp.lt.s32.totalorder %s3803_s22, %s3803_s22 }
  0x3c   :  { %3120 = vmatpush3.bf16.msra.mxu1 %v3919_v10  ;;  %3216 = vmatpush3.bf16.msra.mxu0 %v3919_v10  ;;  %v3957_v24 = vand.u32 4294901760, %v76_v18  ;;  %v3990_v37 = vsub.f32 %v57_v1, %v86_v4  ;;  %v113_v39 = vand.u32 4294901760, %v3978_v31  ;;  %v116_v40 = vand.u32 4294901760, %v3980_v32  ;;  %v4004_v42 = vld [vmem:[#allocation7 + $0x68] sm:$0xff]  ;;  %v4012_v47 = vld [vmem:[#allocation7 + $0x70] sm:$0xff]  ;;  %v4014_v48 = vld [vmem:[#allocation7 + $0x78] sm:$0xff] }
  0x3d   :  { %3122 = vmatprep.subr.bf16.mxu1 %v3927_v13  ;;  %3218 = vmatprep.subr.bf16.mxu0 %v3927_v13  ;;  %v3998_v38 = vpack.c.bf16 %v110_v30, %v107_v29  ;;  %v4006_v44 = vand.u32 4294901760, %v77_v34  ;;  %v119_v45 = vand.u32 4294901760, %v4002_v41  ;;  %v122_v46 = vand.u32 4294901760, %v4004_v42  ;;  %p3810_p13 = por %p3809_p12, %p3808_p11 }
  0x3e   :  { %v3962_v25 = vsub.f32 %v76_v18, %v3957_v24  ;;  %v186_v49 = vand.u32 4294901760, %v3988_v36  ;;  %v193_v50 = vand.u32 4294901760, %v3990_v37  ;;  %v4024_v51 = vpack.c.bf16 %v116_v40, %v113_v39 }
  0x3f   :  { %v4029_v52 = vsub.f32 %v3909_v2, %v89_v6  ;;  %v4034_v53 = vsub.f32 %v3911_v5, %v92_v9  ;;  %v125_v54 = vand.u32 4294901760, %v4012_v47  ;;  %v128_v55 = vand.u32 4294901760, %v4014_v48  ;;  %p3811_p0 = pnand %p3810_p13, %p3804_p10 }
  0x40   :  { %3124 = vmatpush3.bf16.msra.mxu1 %v3927_v13  ;;  %3220 = vmatpush3.bf16.msra.mxu0 %v3927_v13  ;;  %v165_v33 = vand.u32 4294901760, %v3962_v25  ;;  %v4039_v56 = vsub.f32 %v77_v34, %v4006_v44  ;;  %v4047_v57 = vpack.c.bf16 %v122_v46, %v119_v45  ;;  %v187_v58 = vsub.f32 %v3988_v36, %v186_v49 }
  0x41   :  { %3126 = vmatprep.subr.bf16.mxu1 %v3949_v19  ;;  %3222 = vmatprep.subr.bf16.mxu0 %v3949_v19  ;;  %v194_v59 = vsub.f32 %v3990_v37, %v193_v50  ;;  %v200_v60 = vand.u32 4294901760, %v4029_v52  ;;  %v207_v61 = vand.u32 4294901760, %v4034_v53  ;;  %v4058_v62 = vsub.f32 %v3914_v7, %v95_v11 }
  0x42   :  { %v166_v35 = vsub.f32 %v3962_v25, %v165_v33  ;;  %2624 = vmatprep.mubr.f32.mxu0 %v165_v33  ;;  %v4063_v63 = vsub.f32 %v3916_v8, %v98_v12  ;;  %v4069_v0 = vpack.c.bf16 %v128_v55, %v125_v54  ;;  %v175_v1 = vand.u32 4294901760, %v4039_v56 }
  0x43   :  { %v188_v2 = vand.u32 4294901760, %v187_v58  ;;  %v195_v3 = vand.u32 4294901760, %v194_v59  ;;  %v4077_v4 = vsub.f32 %v3929_v14, %v101_v20  ;;  %v4082_v5 = vsub.f32 %v3931_v15, %v104_v21 }
  0x44   :  { %3128 = vmatpush3.bf16.msra.mxu1 %v3949_v19  ;;  %3224 = vmatpush3.bf16.msra.mxu0 %v3949_v19  ;;  %v167_v43 = vand.u32 4294901760, %v166_v35  ;;  %v201_v6 = vsub.f32 %v4029_v52, %v200_v60  ;;  %v208_v7 = vsub.f32 %v4034_v53, %v207_v61  ;;  %v214_v8 = vand.u32 4294901760, %v4058_v62 }
  0x45   :  { %3130 = vmatprep.subr.bf16.mxu1 %v3974_v28  ;;  %3226 = vmatprep.subr.bf16.mxu0 %v3974_v28  ;;  %v221_v9 = vand.u32 4294901760, %v4063_v63  ;;  %v4090_v11 = vpack.c.bf16 %v193_v50, %v186_v49  ;;  %v176_v12 = vsub.f32 %v4039_v56, %v175_v1  ;;  %v4096_v14 = vsub.f32 %v3953_v22, %v107_v29 }
  0x46   :  { %2519 = vmatprep.mubr.f32.mxu1 %v167_v43  ;;  %v4100_v15 = vpack.c.bf16 %v195_v3, %v188_v2  ;;  %v228_v18 = vand.u32 4294901760, %v4077_v4  ;;  %v235_v20 = vand.u32 4294901760, %v4082_v5  ;;  %v4107_v21 = vsub.f32 %v3955_v23, %v110_v30 }
  0x47   :  { %v202_v22 = vand.u32 4294901760, %v201_v6  ;;  %v209_v29 = vand.u32 4294901760, %v208_v7  ;;  %v215_v33 = vsub.f32 %v4058_v62, %v214_v8  ;;  %v222_v34 = vsub.f32 %v4063_v63, %v221_v9 }
  0x48   :  { %3132 = vmatpush3.bf16.msra.mxu1 %v3974_v28  ;;  %3228 = vmatpush3.bf16.msra.mxu0 %v3974_v28  ;;  %v177_v35 = vand.u32 4294901760, %v176_v12  ;;  %v242_v43 = vand.u32 4294901760, %v4096_v14  ;;  %v4117_v49 = vsub.f32 %v3978_v31, %v113_v39  ;;  %v4121_v23 = vpack.c.bf16 %v207_v61, %v200_v60 }
  0x49   :  { %3134 = vmatprep.subr.bf16.mxu1 %v3998_v38  ;;  %3230 = vmatprep.subr.bf16.mxu0 %v3998_v38  ;;  %v229_v30 = vsub.f32 %v4077_v4, %v228_v18  ;;  %v236_v50 = vsub.f32 %v4082_v5, %v235_v20  ;;  %v249_v58 = vand.u32 4294901760, %v4107_v21  ;;  %v4128_v59 = vpack.c.bf16 %v209_v29, %v202_v22 }
  0x4a   :  { %v216_v31 = vand.u32 4294901760, %v215_v33  ;;  %v223_v39 = vand.u32 4294901760, %v222_v34  ;;  %v4133_v2 = vsub.f32 %v3980_v32, %v116_v40  ;;  %v243_v60 = vsub.f32 %v4096_v14, %v242_v43 }
  0x4b   :  { %v256_v61 = vand.u32 4294901760, %v4117_v49  ;;  %v230_v3 = vand.u32 4294901760, %v229_v30  ;;  %v237_v6 = vand.u32 4294901760, %v236_v50  ;;  %v250_v7 = vsub.f32 %v4107_v21, %v249_v58 }
  0x4c   :  { %3136 = vmatpush3.bf16.msra.mxu1 %v3998_v38  ;;  %3232 = vmatpush3.bf16.msra.mxu0 %v3998_v38  ;;  %v4143_v12 = vsub.f32 %v4002_v41, %v119_v45  ;;  %v4147_v32 = vpack.c.bf16 %v223_v39, %v216_v31  ;;  %v4149_v40 = vpack.c.bf16 %v221_v9, %v214_v8  ;;  %v244_v45 = vand.u32 4294901760, %v243_v60 }
  0x4d   :  { %3138 = vmatprep.subr.bf16.mxu1 %v4024_v51  ;;  %3234 = vmatprep.subr.bf16.mxu0 %v4024_v51  ;;  %v4155_v22 = vsub.f32 %v4004_v42, %v122_v46  ;;  %v4159_v41 = vpack.c.bf16 %v235_v20, %v228_v18  ;;  %v4163_v8 = vpack.c.bf16 %v237_v6, %v230_v3  ;;  %v251_v9 = vand.u32 4294901760, %v250_v7 }
  0x4e   :  { %v257_v29 = vsub.f32 %v4117_v49, %v256_v61  ;;  %v270_v33 = vand.u32 4294901760, %v4143_v12  ;;  %v4174_v18 = vsub.f32 %v4012_v47, %v125_v54  ;;  %v4179_v20 = vsub.f32 %v4014_v48, %v128_v55 }
  0x4f   :  { %v277_v46 = vand.u32 4294901760, %v4155_v22  ;;  %v4183_v34 = vpack.c.bf16 %v251_v9, %v244_v45 }
  0x50   :  { %3140 = vmatpush3.bf16.msra.mxu1 %v4024_v51  ;;  %3236 = vmatpush3.bf16.msra.mxu0 %v4024_v51  ;;  %v258_v30 = vand.u32 4294901760, %v257_v29  ;;  %v271_v50 = vsub.f32 %v4143_v12, %v270_v33  ;;  %v284_v48 = vand.u32 4294901760, %v4174_v18  ;;  %v291_v55 = vand.u32 4294901760, %v4179_v20 }
  0x51   :  { %3142 = vmatprep.subr.bf16.mxu1 %v4047_v57  ;;  %3238 = vmatprep.subr.bf16.mxu0 %v4047_v57  ;;  %v278_v54 = vsub.f32 %v4155_v22, %v277_v46  ;;  %v4209_v6 = vpack.c.bf16 %v277_v46, %v270_v33  ;;  %v4225_v29 = vpack.c.bf16 %v3990_v37, %v3988_v36 }
  0x52   :  { %v285_v60 = vsub.f32 %v4174_v18, %v284_v48  ;;  %v292_v3 = vsub.f32 %v4179_v20, %v291_v55  ;;  %v4217_v9 = vpack.c.bf16 %v291_v55, %v284_v48  ;;  %v4233_v33 = vpack.c.bf16 %v4034_v53, %v4029_v52 }
  0x53   :  { %v279_v39 = vand.u32 4294901760, %v278_v54  ;;  %v4243_v36 = vpack.c.bf16 %v4063_v63, %v4058_v62  ;;  %v4253_v37 = vpack.c.bf16 %v4082_v5, %v4077_v4  ;;  %v80_v52 = vmul.f32 %v3937_v17, %v3937_v17 }
  0x54   :  { %3144 = vmatpush3.bf16.msra.mxu1 %v4047_v57  ;;  %3240 = vmatpush3.bf16.msra.mxu0 %v4047_v57  ;;  %v286_v7 = vand.u32 4294901760, %v285_v60  ;;  %v4273_v53 = vpack.c.bf16 %v4133_v2, %v4117_v49  ;;  %v4299_v5 = vpack.c.bf16 %v4179_v20, %v4174_v18 }
  0x55   :  { %3146 = vmatprep.subr.bf16.mxu1 %v4069_v0  ;;  %3242 = vmatprep.subr.bf16.mxu0 %v4069_v0  ;;  %v4277_v63 = vand.u32 4294901760, %v80_v52 }
  0x57   :  { %v4291_v4 = vsub.f32 %v80_v52, %v4277_v63 }
  0x58   :  { %3148 = vmatpush3.bf16.msra.mxu1 %v4069_v0  ;;  %3244 = vmatpush3.bf16.msra.mxu0 %v4069_v0 }
  0x59   :  { %3150 = vmatprep.subr.bf16.mxu1 %v4100_v15  ;;  %3246 = vmatprep.subr.bf16.mxu0 %v4090_v11 }
  0x5b   :  { %2520 = vmatmul.mubr.f32.vlgmr.msra.gmra.mrb[0].mxu1 %v177_v35  ;;  %2625 = vmatmul.mubr.f32.vlgmr.msra.gmra.mrb[0].mxu0 %v175_v1  ;;  %v263_v1 = vand.u32 4294901760, %v4133_v2  ;;  %v4185_v35 = vpack.c.bf16 %v249_v58, %v242_v43  ;;  %v272_v58 = vand.u32 4294901760, %v271_v50 }
  0x5c   :  { %3152 = vmatpush3.bf16.msra.mxu1 %v4100_v15  ;;  %3248 = vmatpush3.bf16.msra.mxu0 %v4090_v11 }
  0x5d   :  { %3154 = vmatprep.subr.bf16.mxu1 %v4128_v59  ;;  %3250 = vmatprep.subr.bf16.mxu0 %v4121_v23  ;;  %v264_v42 = vsub.f32 %v4133_v2, %v263_v1  ;;  %v4195_v43 = vpack.c.bf16 %v263_v1, %v256_v61  ;;  %v4207_v61 = vpack.c.bf16 %v279_v39, %v272_v58  ;;  %v293_v1 = vand.u32 4294901760, %v292_v3 }
  0x5e   :  { %2554 = vmatprep.mubr.f32.mxu1 %v3957_v24  ;;  %2659 = vmatprep.mubr.f32.mxu0 %v3957_v24 }
  0x5f   :  { %v265_v47 = vand.u32 4294901760, %v264_v42  ;;  %v4215_v45 = vpack.c.bf16 %v293_v1, %v286_v7 }
  0x60   :  { %3156 = vmatpush3.bf16.msra.mxu1 %v4128_v59  ;;  %3252 = vmatpush3.bf16.msra.mxu0 %v4121_v23 }
  0x61   :  { %3158 = vmatprep.subr.bf16.mxu1 %v4147_v32  ;;  %3254 = vmatprep.subr.bf16.mxu0 %v4149_v40  ;;  %v4199_v31 = vpack.c.bf16 %v265_v47, %v258_v30 }
  0x64   :  { %3160 = vmatpush3.bf16.msra.mxu1 %v4147_v32  ;;  %3256 = vmatpush3.bf16.msra.mxu0 %v4149_v40 }
  0x65   :  { %3162 = vmatprep.subr.bf16.mxu1 %v4163_v8  ;;  %3258 = vmatprep.subr.bf16.mxu0 %v4159_v41 }
  0x68   :  { %3164 = vmatpush3.bf16.msra.mxu1 %v4163_v8  ;;  %3260 = vmatpush3.bf16.msra.mxu0 %v4159_v41 }
  0x69   :  { %3166 = vmatprep.subr.bf16.mxu1 %v4183_v34  ;;  %3262 = vmatprep.subr.bf16.mxu0 %v4185_v35 }
  0x6c   :  { %3168 = vmatpush3.bf16.msra.mxu1 %v4183_v34  ;;  %3264 = vmatpush3.bf16.msra.mxu0 %v4185_v35 }
  0x6d   :  { %3170 = vmatprep.subr.bf16.mxu1 %v4199_v31  ;;  %3266 = vmatprep.subr.bf16.mxu0 %v4195_v43 }
  0x70   :  { %3172 = vmatpush3.bf16.msra.mxu1 %v4199_v31  ;;  %3268 = vmatpush3.bf16.msra.mxu0 %v4195_v43 }
  0x71   :  { %3174 = vmatprep.subr.bf16.mxu1 %v4207_v61  ;;  %3270 = vmatprep.subr.bf16.mxu0 %v4209_v6 }
  0x74   :  { %3176 = vmatpush3.bf16.msra.mxu1 %v4207_v61  ;;  %3272 = vmatpush3.bf16.msra.mxu0 %v4209_v6 }
  0x75   :  { %3178 = vmatprep.subr.bf16.mxu1 %v4215_v45  ;;  %3274 = vmatprep.subr.bf16.mxu0 %v4217_v9 }
  0x78   :  { %3180 = vmatpush3.bf16.msra.mxu1 %v4215_v45  ;;  %3276 = vmatpush3.bf16.msra.mxu0 %v4217_v9 }
  0x79   :  { %3182 = vmatprep.subr.bf16.mxu1 %v4225_v29  ;;  %3278 = vmatprep.subr.bf16.mxu0 %v3919_v10 }
  0x7b   :  { %2555 = vmatmul.mubr.f32.vlgmr.msra.gmra.mrb[0].mxu1 %v4006_v44  ;;  %2660 = vmatmul.mubr.f32.vlgmr.msra.gmra.mrb[0].mxu0 %v4006_v44 }
  0x7c   :  { %3184 = vmatpush3.bf16.msra.mxu1 %v4225_v29  ;;  %3280 = vmatpush3.bf16.msra.mxu0 %v3919_v10 }
  0x7d   :  { %3186 = vmatprep.subr.bf16.mxu1 %v4233_v33  ;;  %3282 = vmatprep.subr.bf16.mxu0 %v3927_v13 }
  0x7e   :  { %2589 = vmatprep.mubr.f32.mxu1 %v3962_v25  ;;  %2694 = vmatprep.mubr.f32.mxu0 %v3957_v24  ;;  %v4261_v24 = vpack.c.bf16 %v4107_v21, %v4096_v14  ;;  %v78_v25 = vmul.f32 %v3935_v16, %v3935_v16  ;;  %v4285_v16 = vpack.c.bf16 %v4155_v22, %v4143_v12  ;;  %v1533_v21 = vand.u32 4294901760, %v4291_v4 }
  0x80   :  { %3188 = vmatpush3.bf16.msra.mxu1 %v4233_v33  ;;  %3284 = vmatpush3.bf16.msra.mxu0 %v3927_v13  ;;  %v4275_v62 = vand.u32 4294901760, %v78_v25  ;;  %v1534_v2 = vsub.f32 %v4291_v4, %v1533_v21 }
  0x81   :  { %3190 = vmatprep.subr.bf16.mxu1 %v4243_v36  ;;  %3286 = vmatprep.subr.bf16.mxu0 %v3949_v19 }
  0x82   :  { %v4288_v17 = vsub.f32 %v78_v25, %v4275_v62  ;;  %v1535_v22 = vand.u32 4294901760, %v1534_v2 }
  0x84   :  { %3192 = vmatpush3.bf16.msra.mxu1 %v4243_v36  ;;  %3288 = vmatpush3.bf16.msra.mxu0 %v3949_v19  ;;  %v849_v14 = vand.u32 4294901760, %v4288_v17 }
  0x85   :  { %3194 = vmatprep.subr.bf16.mxu1 %v4253_v37  ;;  %3290 = vmatprep.subr.bf16.mxu0 %v3974_v28 }
  0x86   :  { %v850_v49 = vsub.f32 %v4288_v17, %v849_v14 }
  0x88   :  { %3196 = vmatpush3.bf16.msra.mxu1 %v4253_v37  ;;  %3292 = vmatpush3.bf16.msra.mxu0 %v3974_v28  ;;  %v851_v12 = vand.u32 4294901760, %v850_v49 }
  0x89   :  { %3198 = vmatprep.subr.bf16.mxu1 %v4261_v24  ;;  %3294 = vmatprep.subr.bf16.mxu0 %v3998_v38 }
  0x8c   :  { %3200 = vmatpush3.bf16.msra.mxu1 %v4261_v24  ;;  %3296 = vmatpush3.bf16.msra.mxu0 %v3998_v38 }
  0x8d   :  { %3202 = vmatprep.subr.bf16.mxu1 %v4273_v53  ;;  %3298 = vmatprep.subr.bf16.mxu0 %v4024_v51 }
  0x90   :  { %3204 = vmatpush3.bf16.msra.mxu1 %v4273_v53  ;;  %3300 = vmatpush3.bf16.msra.mxu0 %v4024_v51 }
  0x91   :  { %3206 = vmatprep.subr.bf16.mxu1 %v4285_v16  ;;  %3302 = vmatprep.subr.bf16.mxu0 %v4047_v57 }
  0x94   :  { %3208 = vmatpush3.bf16.msra.mxu1 %v4285_v16  ;;  %3304 = vmatpush3.bf16.msra.mxu0 %v4047_v57 }
  0x95   :  { %3210 = vmatprep.subr.bf16.mxu1 %v4299_v5  ;;  %3306 = vmatprep.subr.bf16.mxu0 %v4069_v0 }
  0x98   :  { %3212 = vmatpush3.bf16.msra.mxu1 %v4299_v5  ;;  %3308 = vmatpush3.bf16.msra.mxu0 %v4069_v0 }
  0x99   :  { %3310 = vmatprep.subr.bf16.mxu1 %v3919_v10  ;;  %3502 = vmatprep.subr.bf16.mxu0 %v3919_v10 }
  0x9b   :  { %2590 = vmatmul.mubr.f32.vlgmr.msra.gmra.mrb[0].mxu1 %v4039_v56  ;;  %2695 = vmatmul.mubr.f32.vlgmr.msra.gmra.mrb[0].mxu0 %v4006_v44  ;;  %v79_v44 = vmul.f32 %v3964_v26, %v3964_v26  ;;  %v81_v56 = vmul.f32 %v3966_v27, %v3966_v27 }
  0x9c   :  { %3312 = vmatpush3.bf16.msra.mxu1 %v3919_v10  ;;  %3504 = vmatpush3.bf16.msra.mxu0 %v3919_v10 }
  0x9d   :  { %3314 = vmatprep.subr.bf16.mxu1 %v3927_v13  ;;  %3506 = vmatprep.subr.bf16.mxu0 %v3927_v13  ;;  %v4335_v42 = vand.u32 4294901760, %v79_v44  ;;  %v4337_v46 = vand.u32 4294901760, %v81_v56 }
  0x9e   :  { %2729 = vmatprep.mubr.f32.mxu1 %v851_v12  ;;  %2939 = vmatprep.mubr.f32.mxu0 %v1535_v22 }
  0x9f   :  { %v4344_v26 = vsub.f32 %v79_v44, %v4335_v42  ;;  %v4347_v27 = vsub.f32 %v81_v56, %v4337_v46 }
  0xa0   :  { %3316 = vmatpush3.bf16.msra.mxu1 %v3927_v13  ;;  %3508 = vmatpush3.bf16.msra.mxu0 %v3927_v13 }
  0xa1   :  { %3318 = vmatprep.subr.bf16.mxu1 %v3949_v19  ;;  %3510 = vmatprep.subr.bf16.mxu0 %v3949_v19  ;;  %v859_v18 = vand.u32 4294901760, %v4344_v26  ;;  %v1543_v20 = vand.u32 4294901760, %v4347_v27 }
  0xa3   :  { %v860_v30 = vsub.f32 %v4344_v26, %v859_v18  ;;  %v1544_v50 = vsub.f32 %v4347_v27, %v1543_v20 }
  0xa4   :  { %3320 = vmatpush3.bf16.msra.mxu1 %v3949_v19  ;;  %3512 = vmatpush3.bf16.msra.mxu0 %v3949_v19 }
  0xa5   :  { %3322 = vmatprep.subr.bf16.mxu1 %v3974_v28  ;;  %3514 = vmatprep.subr.bf16.mxu0 %v3974_v28  ;;  %v861_v47 = vand.u32 4294901760, %v860_v30  ;;  %v1545_v54 = vand.u32 4294901760, %v1544_v50 }
  0xa8   :  { %3324 = vmatpush3.bf16.msra.mxu1 %v3974_v28  ;;  %3516 = vmatpush3.bf16.msra.mxu0 %v3974_v28 }
  0xa9   :  { %3326 = vmatprep.subr.bf16.mxu1 %v3998_v38  ;;  %3518 = vmatprep.subr.bf16.mxu0 %v3998_v38 }
  0xac   :  { %3328 = vmatpush3.bf16.msra.mxu1 %v3998_v38  ;;  %3520 = vmatpush3.bf16.msra.mxu0 %v3998_v38 }
  0xad   :  { %3330 = vmatprep.subr.bf16.mxu1 %v4024_v51  ;;  %3522 = vmatprep.subr.bf16.mxu0 %v4024_v51 }
  0xb0   :  { %3332 = vmatpush3.bf16.msra.mxu1 %v4024_v51  ;;  %3524 = vmatpush3.bf16.msra.mxu0 %v4024_v51 }
  0xb1   :  { %3334 = vmatprep.subr.bf16.mxu1 %v4047_v57  ;;  %3526 = vmatprep.subr.bf16.mxu0 %v4047_v57 }
  0xb4   :  { %3336 = vmatpush3.bf16.msra.mxu1 %v4047_v57  ;;  %3528 = vmatpush3.bf16.msra.mxu0 %v4047_v57 }
  0xb5   :  { %3338 = vmatprep.subr.bf16.mxu1 %v4069_v0  ;;  %3530 = vmatprep.subr.bf16.mxu0 %v4069_v0 }
  0xb8   :  { %3340 = vmatpush3.bf16.msra.mxu1 %v4069_v0  ;;  %3532 = vmatpush3.bf16.msra.mxu0 %v4069_v0 }
  0xb9   :  { %3342 = vmatprep.subr.bf16.mxu1 %v4100_v15  ;;  %3534 = vmatprep.subr.bf16.mxu0 %v4100_v15 }
  0xbb   :  { %2730 = vmatmul.mubr.f32.vlgmr.msra.gmra.mrb[2].mxu1 %v861_v47  ;;  %2940 = vmatmul.mubr.f32.vlgmr.msra.gmra.mrb[2].mxu0 %v1545_v54 }
  0xbc   :  { %3344 = vmatpush3.bf16.msra.mxu1 %v4100_v15  ;;  %3536 = vmatpush3.bf16.msra.mxu0 %v4100_v15 }
  0xbd   :  { %3346 = vmatprep.subr.bf16.mxu1 %v4128_v59  ;;  %3538 = vmatprep.subr.bf16.mxu0 %v4128_v59 }
  0xbe   :  { %2764 = vmatprep.mubr.f32.mxu1 %v4275_v62  ;;  %2974 = vmatprep.mubr.f32.mxu0 %v4277_v63 }
  0xc0   :  { %3348 = vmatpush3.bf16.msra.mxu1 %v4128_v59  ;;  %3540 = vmatpush3.bf16.msra.mxu0 %v4128_v59 }
  0xc1   :  { %3350 = vmatprep.subr.bf16.mxu1 %v4147_v32  ;;  %3542 = vmatprep.subr.bf16.mxu0 %v4147_v32 }
  0xc4   :  { %3352 = vmatpush3.bf16.msra.mxu1 %v4147_v32  ;;  %3544 = vmatpush3.bf16.msra.mxu0 %v4147_v32 }
  0xc5   :  { %3354 = vmatprep.subr.bf16.mxu1 %v4163_v8  ;;  %3546 = vmatprep.subr.bf16.mxu0 %v4163_v8 }
  0xc8   :  { %3356 = vmatpush3.bf16.msra.mxu1 %v4163_v8  ;;  %3548 = vmatpush3.bf16.msra.mxu0 %v4163_v8 }
  0xc9   :  { %3358 = vmatprep.subr.bf16.mxu1 %v4183_v34  ;;  %3550 = vmatprep.subr.bf16.mxu0 %v4183_v34 }
  0xcc   :  { %3360 = vmatpush3.bf16.msra.mxu1 %v4183_v34  ;;  %3552 = vmatpush3.bf16.msra.mxu0 %v4183_v34 }
  0xcd   :  { %3362 = vmatprep.subr.bf16.mxu1 %v4199_v31  ;;  %3554 = vmatprep.subr.bf16.mxu0 %v4199_v31 }
  0xd0   :  { %3364 = vmatpush3.bf16.msra.mxu1 %v4199_v31  ;;  %3556 = vmatpush3.bf16.msra.mxu0 %v4199_v31 }
  0xd1   :  { %3366 = vmatprep.subr.bf16.mxu1 %v4207_v61  ;;  %3558 = vmatprep.subr.bf16.mxu0 %v4207_v61 }
  0xd4   :  { %3368 = vmatpush3.bf16.msra.mxu1 %v4207_v61  ;;  %3560 = vmatpush3.bf16.msra.mxu0 %v4207_v61 }
  0xd5   :  { %3370 = vmatprep.subr.bf16.mxu1 %v4215_v45  ;;  %3562 = vmatprep.subr.bf16.mxu0 %v4215_v45 }
  0xd8   :  { %3372 = vmatpush3.bf16.msra.mxu1 %v4215_v45  ;;  %3564 = vmatpush3.bf16.msra.mxu0 %v4215_v45 }
  0xd9   :  { %3374 = vmatprep.subr.bf16.mxu1 %v4225_v29  ;;  %3566 = vmatprep.subr.bf16.mxu0 %v4225_v29 }
  0xdb   :  { %2765 = vmatmul.mubr.f32.vlgmr.msra.gmra.mrb[2].mxu1 %v4335_v42  ;;  %2975 = vmatmul.mubr.f32.vlgmr.msra.gmra.mrb[2].mxu0 %v4337_v46 }
  0xdc   :  { %3376 = vmatpush3.bf16.msra.mxu1 %v4225_v29  ;;  %3568 = vmatpush3.bf16.msra.mxu0 %v4225_v29 }
  0xdd   :  { %3378 = vmatprep.subr.bf16.mxu1 %v4233_v33  ;;  %3570 = vmatprep.subr.bf16.mxu0 %v4233_v33 }
  0xde   :  { %2799 = vmatprep.mubr.f32.mxu1 %v4288_v17  ;;  %3009 = vmatprep.mubr.f32.mxu0 %v4291_v4 }
  0xe0   :  { %3380 = vmatpush3.bf16.msra.mxu1 %v4233_v33  ;;  %3572 = vmatpush3.bf16.msra.mxu0 %v4233_v33 }
  0xe1   :  { %3382 = vmatprep.subr.bf16.mxu1 %v4243_v36  ;;  %3574 = vmatprep.subr.bf16.mxu0 %v4243_v36 }
  0xe4   :  { %3384 = vmatpush3.bf16.msra.mxu1 %v4243_v36  ;;  %3576 = vmatpush3.bf16.msra.mxu0 %v4243_v36 }
  0xe5   :  { %3386 = vmatprep.subr.bf16.mxu1 %v4253_v37  ;;  %3578 = vmatprep.subr.bf16.mxu0 %v4253_v37 }
  0xe8   :  { %3388 = vmatpush3.bf16.msra.mxu1 %v4253_v37  ;;  %3580 = vmatpush3.bf16.msra.mxu0 %v4253_v37 }
  0xe9   :  { %3390 = vmatprep.subr.bf16.mxu1 %v4261_v24  ;;  %3582 = vmatprep.subr.bf16.mxu0 %v4261_v24 }
  0xec   :  { %3392 = vmatpush3.bf16.msra.mxu1 %v4261_v24  ;;  %3584 = vmatpush3.bf16.msra.mxu0 %v4261_v24 }
  0xed   :  { %3394 = vmatprep.subr.bf16.mxu1 %v4273_v53  ;;  %3586 = vmatprep.subr.bf16.mxu0 %v4273_v53 }
  0xf0   :  { %3396 = vmatpush3.bf16.msra.mxu1 %v4273_v53  ;;  %3588 = vmatpush3.bf16.msra.mxu0 %v4273_v53 }
  0xf1   :  { %3398 = vmatprep.subr.bf16.mxu1 %v4285_v16  ;;  %3590 = vmatprep.subr.bf16.mxu0 %v4285_v16 }
  0xf4   :  { %3400 = vmatpush3.bf16.msra.mxu1 %v4285_v16  ;;  %3592 = vmatpush3.bf16.msra.mxu0 %v4285_v16 }
  0xf5   :  { %3402 = vmatprep.subr.bf16.mxu1 %v4299_v5  ;;  %3594 = vmatprep.subr.bf16.mxu0 %v4299_v5 }
  0xf8   :  { %3404 = vmatpush3.bf16.msra.mxu1 %v4299_v5  ;;  %3596 = vmatpush3.bf16.msra.mxu0 %v4299_v5 }
  0xf9   :  { %3406 = vmatprep.subr.bf16.mxu1 %v3919_v10  ;;  %3598 = vmatprep.subr.bf16.mxu0 %v3919_v10 }
  0xfb   :  { %2800 = vmatmul.mubr.f32.vlgmr.msra.gmra.mrb[2].mxu1 %v4344_v26  ;;  %3010 = vmatmul.mubr.f32.vlgmr.msra.gmra.mrb[2].mxu0 %v4347_v27 }
  0xfc   :  { %3408 = vmatpush3.bf16.msra.mxu1 %v3919_v10  ;;  %3600 = vmatpush3.bf16.msra.mxu0 %v3919_v10 }
  0xfd   :  { %3410 = vmatprep.subr.bf16.mxu1 %v3927_v13  ;;  %3602 = vmatprep.subr.bf16.mxu0 %v3927_v13 }
  0xfe   :  { %2834 = vmatprep.mubr.f32.mxu1 %v849_v14  ;;  %3044 = vmatprep.mubr.f32.mxu0 %v1533_v21 }
 0x100   :  { %3412 = vmatpush3.bf16.msra.mxu1 %v3927_v13  ;;  %3604 = vmatpush3.bf16.msra.mxu0 %v3927_v13 }
 0x101   :  { %3414 = vmatprep.subr.bf16.mxu1 %v3949_v19  ;;  %3606 = vmatprep.subr.bf16.mxu0 %v3949_v19 }
 0x104   :  { %3416 = vmatpush3.bf16.msra.mxu1 %v3949_v19  ;;  %3608 = vmatpush3.bf16.msra.mxu0 %v3949_v19 }
 0x105   :  { %3418 = vmatprep.subr.bf16.mxu1 %v3974_v28  ;;  %3610 = vmatprep.subr.bf16.mxu0 %v3974_v28 }
 0x108   :  { %3420 = vmatpush3.bf16.msra.mxu1 %v3974_v28  ;;  %3612 = vmatpush3.bf16.msra.mxu0 %v3974_v28 }
 0x109   :  { %3422 = vmatprep.subr.bf16.mxu1 %v3998_v38  ;;  %3614 = vmatprep.subr.bf16.mxu0 %v3998_v38 }
 0x10c   :  { %3424 = vmatpush3.bf16.msra.mxu1 %v3998_v38  ;;  %3616 = vmatpush3.bf16.msra.mxu0 %v3998_v38 }
 0x10d   :  { %3426 = vmatprep.subr.bf16.mxu1 %v4024_v51  ;;  %3618 = vmatprep.subr.bf16.mxu0 %v4024_v51 }
 0x110   :  { %3428 = vmatpush3.bf16.msra.mxu1 %v4024_v51  ;;  %3620 = vmatpush3.bf16.msra.mxu0 %v4024_v51 }
 0x111   :  { %3430 = vmatprep.subr.bf16.mxu1 %v4047_v57  ;;  %3622 = vmatprep.subr.bf16.mxu0 %v4047_v57 }
 0x114   :  { %3432 = vmatpush3.bf16.msra.mxu1 %v4047_v57  ;;  %3624 = vmatpush3.bf16.msra.mxu0 %v4047_v57 }
 0x115   :  { %3434 = vmatprep.subr.bf16.mxu1 %v4069_v0  ;;  %3626 = vmatprep.subr.bf16.mxu0 %v4069_v0 }
 0x118   :  { %3436 = vmatpush3.bf16.msra.mxu1 %v4069_v0  ;;  %3628 = vmatpush3.bf16.msra.mxu0 %v4069_v0 }
 0x119   :  { %3438 = vmatprep.subr.bf16.mxu1 %v4090_v11  ;;  %3630 = vmatprep.subr.bf16.mxu0 %v4090_v11 }
 0x11b   :  { %2835 = vmatmul.mubr.f32.vlgmr.msra.gmra.mrb[2].mxu1 %v859_v18  ;;  %3045 = vmatmul.mubr.f32.vlgmr.msra.gmra.mrb[2].mxu0 %v1543_v20 }
 0x11c   :  { %3440 = vmatpush3.bf16.msra.mxu1 %v4090_v11  ;;  %3632 = vmatpush3.bf16.msra.mxu0 %v4090_v11 }
 0x11d   :  { %3442 = vmatprep.subr.bf16.mxu1 %v4121_v23  ;;  %3634 = vmatprep.subr.bf16.mxu0 %v4121_v23 }
 0x11e   :  { %2869 = vmatprep.mubr.f32.mxu1 %v4275_v62  ;;  %3079 = vmatprep.mubr.f32.mxu0 %v4277_v63 }
 0x120   :  { %3444 = vmatpush3.bf16.msra.mxu1 %v4121_v23  ;;  %3636 = vmatpush3.bf16.msra.mxu0 %v4121_v23 }
 0x121   :  { %3446 = vmatprep.subr.bf16.mxu1 %v4149_v40  ;;  %3638 = vmatprep.subr.bf16.mxu0 %v4149_v40 }
 0x124   :  { %3448 = vmatpush3.bf16.msra.mxu1 %v4149_v40  ;;  %3640 = vmatpush3.bf16.msra.mxu0 %v4149_v40 }
 0x125   :  { %3450 = vmatprep.subr.bf16.mxu1 %v4159_v41  ;;  %3642 = vmatprep.subr.bf16.mxu0 %v4159_v41 }
 0x128   :  { %3452 = vmatpush3.bf16.msra.mxu1 %v4159_v41  ;;  %3644 = vmatpush3.bf16.msra.mxu0 %v4159_v41 }
 0x129   :  { %3454 = vmatprep.subr.bf16.mxu1 %v4185_v35  ;;  %3646 = vmatprep.subr.bf16.mxu0 %v4185_v35 }
 0x12c   :  { %3456 = vmatpush3.bf16.msra.mxu1 %v4185_v35  ;;  %3648 = vmatpush3.bf16.msra.mxu0 %v4185_v35 }
 0x12d   :  { %3458 = vmatprep.subr.bf16.mxu1 %v4195_v43  ;;  %3650 = vmatprep.subr.bf16.mxu0 %v4195_v43 }
 0x130   :  { %3460 = vmatpush3.bf16.msra.mxu1 %v4195_v43  ;;  %3652 = vmatpush3.bf16.msra.mxu0 %v4195_v43 }
 0x131   :  { %3462 = vmatprep.subr.bf16.mxu1 %v4209_v6  ;;  %3654 = vmatprep.subr.bf16.mxu0 %v4209_v6 }
 0x134   :  { %3464 = vmatpush3.bf16.msra.mxu1 %v4209_v6  ;;  %3656 = vmatpush3.bf16.msra.mxu0 %v4209_v6 }
 0x135   :  { %3466 = vmatprep.subr.bf16.mxu1 %v4217_v9  ;;  %3658 = vmatprep.subr.bf16.mxu0 %v4217_v9 }
 0x138   :  { %3468 = vmatpush3.bf16.msra.mxu1 %v4217_v9  ;;  %3660 = vmatpush3.bf16.msra.mxu0 %v4217_v9 }
 0x139   :  { %3470 = vmatprep.subr.bf16.mxu1 %v3919_v10  ;;  %3662 = vmatprep.subr.bf16.mxu0 %v3919_v10 }
 0x13b   :  { %2870 = vmatmul.mubr.f32.vlgmr.msra.gmra.mrb[2].mxu1 %v4335_v42  ;;  %3080 = vmatmul.mubr.f32.vlgmr.msra.gmra.mrb[2].mxu0 %v4337_v46 }
 0x13c   :  { %3472 = vmatpush3.bf16.msra.mxu1 %v3919_v10  ;;  %3664 = vmatpush3.bf16.msra.mxu0 %v3919_v10 }
 0x13d   :  { %3474 = vmatprep.subr.bf16.mxu1 %v3927_v13  ;;  %3666 = vmatprep.subr.bf16.mxu0 %v3927_v13 }
 0x13e   :  { %2904 = vmatprep.mubr.f32.mxu1 %v4275_v62  ;;  %3114 = vmatprep.mubr.f32.mxu0 %v4277_v63 }
 0x140   :  { %3476 = vmatpush3.bf16.msra.mxu1 %v3927_v13  ;;  %3668 = vmatpush3.bf16.msra.mxu0 %v3927_v13 }
 0x141   :  { %3478 = vmatprep.subr.bf16.mxu1 %v3949_v19  ;;  %3670 = vmatprep.subr.bf16.mxu0 %v3949_v19 }
 0x144   :  { %3480 = vmatpush3.bf16.msra.mxu1 %v3949_v19  ;;  %3672 = vmatpush3.bf16.msra.mxu0 %v3949_v19 }
 0x145   :  { %3482 = vmatprep.subr.bf16.mxu1 %v3974_v28  ;;  %3674 = vmatprep.subr.bf16.mxu0 %v3974_v28 }
 0x148   :  { %3484 = vmatpush3.bf16.msra.mxu1 %v3974_v28  ;;  %3676 = vmatpush3.bf16.msra.mxu0 %v3974_v28 }
 0x149   :  { %3486 = vmatprep.subr.bf16.mxu1 %v3998_v38  ;;  %3678 = vmatprep.subr.bf16.mxu0 %v3998_v38 }
 0x14c   :  { %3488 = vmatpush3.bf16.msra.mxu1 %v3998_v38  ;;  %3680 = vmatpush3.bf16.msra.mxu0 %v3998_v38 }
 0x14d   :  { %3490 = vmatprep.subr.bf16.mxu1 %v4024_v51  ;;  %3682 = vmatprep.subr.bf16.mxu0 %v4024_v51 }
 0x150   :  { %3492 = vmatpush3.bf16.msra.mxu1 %v4024_v51  ;;  %3684 = vmatpush3.bf16.msra.mxu0 %v4024_v51 }
 0x151   :  { %3494 = vmatprep.subr.bf16.mxu1 %v4047_v57  ;;  %3686 = vmatprep.subr.bf16.mxu0 %v4047_v57 }
 0x154   :  { %3496 = vmatpush3.bf16.msra.mxu1 %v4047_v57  ;;  %3688 = vmatpush3.bf16.msra.mxu0 %v4047_v57 }
 0x155   :  { %3498 = vmatprep.subr.bf16.mxu1 %v4069_v0  ;;  %3690 = vmatprep.subr.bf16.mxu0 %v4069_v0 }
 0x158   :  { %3500 = vmatpush3.bf16.msra.mxu1 %v4069_v0  ;;  %3692 = vmatpush3.bf16.msra.mxu0 %v4069_v0 }
 0x15b   :  { %2905 = vmatmul.mubr.f32.vlgmr.msra.gmra.mrb[2].mxu1 %v4335_v42  ;;  %3115 = vmatmul.mubr.f32.vlgmr.msra.gmra.mrb[2].mxu0 %v4337_v46 }
 0x16e   :  { %v2591_v10 = vpop.f32.mrb[0].mxu1  ;;  %v2696_v13 = vpop.f32.mrb[0].mxu0 }
 0x16f   :  { %v3693_v19 = vadd.f32 %v2696_v13, %v2591_v10  ;;  %v440_v28 = vpop.f32.mrb[1].mxu1  ;;  %v756_v38 = vpop.f32.mrb[1].mxu0 }
 0x170   :  { %v3694_v51 = vadd.f32 %v756_v38, %v440_v28 }
 0x22e   :  { %v2906_v11 = vpop.f32.mrb[2].mxu1  ;;  %v3116_v57 = vpop.f32.mrb[2].mxu0 }
 0x22f   :  { %3729 = vrsqrt.f32 %v2906_v11  ;;  %v1440_v15 = vpop.f32.mrb[3].mxu1  ;;  %v2124_v23 = vpop.f32.mrb[3].mxu0 }
 0x230   :  { %3731 = vrsqrt.f32 %v3116_v57 }
 0x231   :  { %3733 = vrsqrt.f32 %v1440_v15 }
 0x232   :  { %3735 = vrsqrt.f32 %v2124_v23 }
 0x239   :  { %v3730_v59 = vpop.eup %3729 }
 0x23a   :  { %v3732_v0 = vpop.eup %3731  ;;  %v2137_v32 = vmul.f32 %v3730_v59, %v3693_v19 }
 0x23b   :  { %v3734_v40 = vpop.eup %3733 }
 0x23c   :  { %v2136_v41 = vmul.f32 %v3734_v40, %v3694_v51  ;;  %v2141_v8 = vmul.f32 %v3732_v0, %v2137_v32  ;;  %v3736_v34 = vpop.eup %3735 }
 0x23e   :  { %v2140_v35 = vmul.f32 %v3736_v34, %v2136_v41  ;;  %2144 = vst.msk [vmem:[#allocation8 + $0x8] sm:$0xff] %vm2142_vm0, %v2141_v8 }
 0x240   :  { %2143 = vst.msk [vmem:[#allocation8] sm:$0xff] %vm2142_vm0, %v2140_v35 }
 0x241   :  { %3814 = shalt.err (!%p3811_p0)
}
 0x242   :  { %s3815_s27 = scalar_lea.hbm %s4573_s3, 256 }
 0x243   :  { %p3816_p1 = scmp.ne.s32.totalorder %s4573_s3, %s3815_s27  ;;  %p3819_p2 = scmp.lt.u32.totalorder %s3815_s27, %s4573_s3 }
 0x245   :  { %p3821_p3 = pnand %p3819_p2, %p3816_p1 }
 0x247   :  { %3824 = shalt.err (!%p3821_p3)
}
 0x248   :  { %2156 = dma.vmem_to_hbm [thread:$0]  %s2151_s21, 256, %s4573_s3, [#allocation4], %s3833_s24, %s3833_s24, %s3834_s25  }
 0x249   :  { %3829 = dma.done.wait [#allocation4], 256  }
 0x24a   :  { %3830 = vsyncadd [#allocation4], 4294967040 }
 0x24b   :  { %2160 = vsyncpa [#allocation3], 1 }
 0x24c   :  { %2161 = vsyncpa [#allocation6], 1 }
 0x24d   :  { %2162 = vsyncpa [#allocation4], 1 }

</bundles_post_ra>
